<compile_context>
chip_gen: v5e
topology: v5e:2x2
jax: 0.10.0
libtpu: 0.0.40
codegen_flags: <defaults>
</compile_context>

<pallas_src>
import jax
import jax.numpy as jnp
from jax.experimental import pallas as pl
from jax.experimental.pallas import tpu as pltpu

BN_EPS = 1e-5


# ---------------------------------------------------------------------------
# Chip / VMEM dispatch
# ---------------------------------------------------------------------------
def _chip_info():
    """Best-effort (is_v5e, is_v7x, vmem_capacity_bytes)."""
    kind = ""
    try:
        kind = jax.devices()[0].device_kind.lower()
    except Exception:
        kind = ""
    is_v7 = "7" in kind
    is_v5 = "v5" in kind
    vmem_bytes = None
    try:
        vmem_bytes = int(pltpu.get_tpu_info().vmem_capacity_bytes)
    except Exception:
        vmem_bytes = None
    if not vmem_bytes or vmem_bytes <= 0:
        vmem_bytes = (64 if is_v7 else 128) * 1024 * 1024
    return is_v5, is_v7, vmem_bytes


def _pick_tile_h(h, is_v5, is_v7):
    if is_v5:
        prefs = (128,)                       # v5e MXU is 4x128x128; 256 buys nothing
    elif is_v7:
        prefs = (256, 128) if h >= 512 else (128,)   # keep >=2 parallel tiles for 2 TCs
    else:
        prefs = (256, 128)                   # v6e: 256 fills the 2x256x256 MXU
    for t in prefs:
        if h % t == 0:
            return t
    return h  # irregular H: full-extent block (legal; masked lane stores, just slower)


def _vmem_estimate(n, tile_k, tile_h, x_bytes, w_bytes, out_bytes):
    return (2 * n * tile_k * x_bytes          # x double buffer
            + 2 * tile_k * tile_h * w_bytes   # W double buffer
            + n * tile_h * 4                  # f32 accumulator scratch
            + 2 * n * tile_h * out_bytes      # output double buffer
            + 2 * 2 * tile_h * 4)             # gamma/beta double buffer


def _pick_tile_k(k, n, tile_h, budget, x_bytes, w_bytes, out_bytes):
    candidates = [t for t in (1024, 512, 256, 128) if k % t == 0]
    candidates.append(k)  # full extent is always legal
    fitting = [t for t in candidates
               if _vmem_estimate(n, t, tile_h, x_bytes, w_bytes, out_bytes) <= budget]
    if fitting:
        return max(fitting)
    return min(candidates)  # best effort; see large-N TODO at the top of the file


# ---------------------------------------------------------------------------
# Kernels
# ---------------------------------------------------------------------------
def _bn_relu_epilogue(z, gb_ref, o_ref):
    """y = ReLU(gamma * (z - mean)/sqrt(var + eps) + beta), batch stats over axis 0."""
    inv_n = jnp.float32(1.0 / z.shape[0])
    mean = jnp.sum(z, axis=0, keepdims=True) * inv_n          # XLU reduction
    ex2 = jnp.sum(z * z, axis=0, keepdims=True) * inv_n
    var = jnp.maximum(ex2 - mean * mean, 0.0)                 # clamp cancellation noise
    scale = gb_ref[0:1, :] * jax.lax.rsqrt(var + BN_EPS)      # gamma folded into scale
    shift = gb_ref[1:2, :] - mean * scale                     # mean folded into shift
    o_ref[...] = jnp.maximum(z * scale + shift, 0.0).astype(o_ref.dtype)


def _layer_kernel_single_k(x_ref, w_ref, gb_ref, o_ref):
    """Single K step: no accumulator scratch, epilogue runs on the dot result value."""
    z = jnp.dot(x_ref[...].astype(w_ref.dtype), w_ref[...],
                preferred_element_type=jnp.float32)
    _bn_relu_epilogue(z, gb_ref, o_ref)


def _layer_kernel_multi_k(x_ref, w_ref, gb_ref, o_ref, acc_ref):
    """K-tiled path: overwrite-on-first-step accumulator, BN/ReLU on the last step."""
    kk = pl.program_id(1)
    partial = jnp.dot(x_ref[...].astype(w_ref.dtype), w_ref[...],
                      preferred_element_type=jnp.float32)

    @pl.when(kk == 0)
    def _():
        acc_ref[...] = partial          # overwrite: no zero-init store + reload

    @pl.when(kk != 0)
    def _():
        acc_ref[...] += partial

    @pl.when(kk == pl.num_programs(1) - 1)
    def _():
        _bn_relu_epilogue(acc_ref[...], gb_ref, o_ref)


# ---------------------------------------------------------------------------
# Wrapper
# ---------------------------------------------------------------------------
def mlp_encoder_layer(x, w, gb, *, out_dtype=None):
    """One encoder layer: ReLU(BN_train(x @ w)) -> [N, H].

    x:  [N, K] float32 (cast to w.dtype inside the kernel, right before the matmul)
    w:  [K, H] matmul-dtype weight (transposed PyTorch weight, pre-cast once by caller)
    gb: [2, H] float32, row 0 = gamma, row 1 = beta
    """
    n, k = x.shape
    kw, h = w.shape
    assert kw == k, (kw, k)
    assert gb.shape == (2, h), gb.shape
    out_dtype = out_dtype or x.dtype

    is_v5, is_v7, vmem_bytes = _chip_info()
    budget = int(0.75 * vmem_bytes)         # ~96 MiB on v5e/v6e, ~48 MiB on v7x

    tile_h = _pick_tile_h(h, is_v5, is_v7)
    x_bytes = jnp.dtype(x.dtype).itemsize
    w_bytes = jnp.dtype(w.dtype).itemsize
    out_bytes = jnp.dtype(out_dtype).itemsize
    tile_k = _pick_tile_k(k, n, tile_h, budget, x_bytes, w_bytes, out_bytes)

    h_steps = h // tile_h
    k_steps = k // tile_k
    cparams_common = dict(vmem_limit_bytes=budget)

    if k_steps == 1:
        return pl.pallas_call(
            _layer_kernel_single_k,
            out_shape=jax.ShapeDtypeStruct((n, h), out_dtype),
            grid_spec=pltpu.PrefetchScalarGridSpec(
                num_scalar_prefetch=0,
                grid=(h_steps,),
                in_specs=[
                    pl.BlockSpec((n, k), lambda j: (0, 0)),            # full x (K fits)
                    pl.BlockSpec((k, tile_h), lambda j: (0, j)),       # W feature tile
                    pl.BlockSpec((2, tile_h), lambda j: (0, j)),       # gamma/beta tile
                ],
                out_specs=pl.BlockSpec((n, tile_h), lambda j: (0, j)),
            ),
            compiler_params=pltpu.CompilerParams(
                dimension_semantics=("parallel",), **cparams_common),
        )(x, w, gb)

    return pl.pallas_call(
        _layer_kernel_multi_k,
        out_shape=jax.ShapeDtypeStruct((n, h), out_dtype),
        grid_spec=pltpu.PrefetchScalarGridSpec(
            num_scalar_prefetch=0,
            grid=(h_steps, k_steps),                                   # reduction last
            in_specs=[
                pl.BlockSpec((n, tile_k), lambda j, kk: (0, kk)),      # x K-tile
                pl.BlockSpec((tile_k, tile_h), lambda j, kk: (kk, j)),  # W tile
                pl.BlockSpec((2, tile_h), lambda j, kk: (0, j)),       # gamma/beta tile
            ],
            out_specs=pl.BlockSpec((n, tile_h), lambda j, kk: (0, j)),
            scratch_shapes=[pltpu.VMEM((n, tile_h), jnp.float32)],
        ),
        compiler_params=pltpu.CompilerParams(
            dimension_semantics=("parallel", "arbitrary"), **cparams_common),
    )(x, w, gb)


# ---------------------------------------------------------------------------
# Params
# ---------------------------------------------------------------------------
def init_mlp_encoder_params(key, in_dim, hidden_dims=None):
    """PyTorch-style init.  Linear: U(+-1/sqrt(fan_in)) weight & bias; BN: gamma=1, beta=0.

    Bias is kept (for the reference check) even though the kernel does not need it
    (exactly cancelled by training-mode BatchNorm's mean subtraction).
    Weight stored as [in, out] (transpose of PyTorch's [out, in]).
    """
    n_h = 128
    if hidden_dims is None:
        hidden_dims = [n_h]
    dims = [in_dim] + list(hidden_dims)
    params = []
    for i in range(len(dims) - 1):
        fan_in, fan_out = dims[i], dims[i + 1]
        key, kw_key, kb_key = jax.random.split(key, 3)
        bound = 1.0 / jnp.sqrt(jnp.float32(fan_in))
        w = jax.random.uniform(kw_key, (fan_in, fan_out), jnp.float32, -bound, bound)
        b = jax.random.uniform(kb_key, (fan_out,), jnp.float32, -bound, bound)
        gamma = jnp.ones((fan_out,), jnp.float32)
        beta = jnp.zeros((fan_out,), jnp.float32)
        params.append((w, b, gamma, beta))
    return params


def prepare_kernel_params(params, matmul_dtype=jnp.bfloat16):
    """One-time prep: pre-cast W to the matmul dtype, pack gamma/beta into a (2, H) slab.

    The cast is done once here (amortized over every forward call) rather than per-call
    in the wrapper.  Pass matmul_dtype=jnp.float32 for accuracy-sensitive consumers.
    """
    kernel_params = []
    for (w, _b, gamma, beta) in params:
        wk = w.astype(matmul_dtype)
        gb = jnp.stack([gamma, beta], axis=0).astype(jnp.float32)   # (2, H)
        kernel_params.append((wk, gb))
    return kernel_params


def mlp_encoder_forward(x, kernel_params, *, out_dtype=None):
    for (w, gb) in kernel_params:
        # Linear bias deliberately dropped: cancelled exactly by training-mode BatchNorm.
        x = mlp_encoder_layer(x, w, gb, out_dtype=out_dtype)
    return x


# ---------------------------------------------------------------------------
# Pure-JAX reference (bias INCLUDED) for the correctness check
# ---------------------------------------------------------------------------
def _reference_forward(x, params, matmul_dtype=jnp.bfloat16):
    for (w, b, gamma, beta) in params:
        z = jnp.dot(x.astype(matmul_dtype), w.astype(matmul_dtype),
                    preferred_element_type=jnp.float32) + b[None, :]
        mean = jnp.mean(z, axis=0, keepdims=True)
        var = jnp.mean((z - mean) ** 2, axis=0, keepdims=True)
        z_hat = (z - mean) / jnp.sqrt(var + BN_EPS)
        x = jnp.maximum(gamma[None, :] * z_hat + beta[None, :], 0.0).astype(jnp.float32)
    return x


if __name__ == "__main__":
    key = jax.random.PRNGKey(0)
    k_x, k_p = jax.random.split(key)

    # Small demo shapes (hidden = 128, the module's default n_h).  NOTE: tiny N is
    # latency/overhead-bound; real throughput needs N in the hundreds or more, ideally a
    # multiple of 8 (f32 sublane pack) / 128+ (MXU M dimension).
    batch, in_dim = 8, 32
    x = jax.random.normal(k_x, (batch, in_dim), jnp.float32)

    params = init_mlp_encoder_params(k_p, in_dim, hidden_dims=None)     # f32 (reference)
    kparams = prepare_kernel_params(params, matmul_dtype=jnp.bfloat16)  # pre-cast once

    out = mlp_encoder_forward(x, kparams)
    out = jax.block_until_ready(out)

    ref = _reference_forward(x, params)
    assert out.shape == (batch, 128), out.shape
    assert jnp.allclose(out, ref, atol=2e-4, rtol=2e-4), "mismatch vs reference"

    print("KERNEL_OK")
</pallas_src>

<mosaic_0001>
module attributes {stable_mosaic.version = 11 : i64} {
  func.func @_layer_kernel_single_k(%arg0: i32, %arg1: memref<8x32xf32, #tpu.memory_space<vmem>>, %arg2: memref<32x128xbf16, #tpu.memory_space<vmem>>, %arg3: memref<2x128xf32, #tpu.memory_space<vmem>>, %arg4: memref<8x128xf32, #tpu.memory_space<vmem>>) attributes {dimension_semantics = [#tpu.dimension_semantics<parallel>], iteration_bounds = array<i64: 1>, scalar_prefetch = 0 : i64, scratch_operands = 0 : i64, tpu.core_type = #tpu.core_type<tc>, window_params = [{pipeline_mode = #tpu.pipeline_mode<synchronous>, transform_indices = @transform_0, window_bounds = array<i64: 8, 32>}, {transform_indices = @transform_1, window_bounds = array<i64: 32, 128>}, {transform_indices = @transform_2, window_bounds = array<i64: 2, 128>}, {transform_indices = @transform_3, window_bounds = array<i64: 8, 128>}]} {
    %c0 = arith.constant 0 : index
    %c0_0 = arith.constant 0 : index
    %0 = vector.load %arg1[%c0, %c0_0] : memref<8x32xf32, #tpu.memory_space<vmem>>, vector<8x32xf32>
    %1 = arith.truncf %0 : vector<8x32xf32> to vector<8x32xbf16>
    %c0_1 = arith.constant 0 : index
    %c0_2 = arith.constant 0 : index
    %2 = vector.load %arg2[%c0_1, %c0_2] : memref<32x128xbf16, #tpu.memory_space<vmem>>, vector<32x128xbf16>
    %cst = arith.constant dense<0.000000e+00> : vector<8x128xf32>
    %3 = tpu.matmul %1, %2, %cst {dimension_numbers = #tpu.dot_dimension_numbers<[1], [0], [0], [1], [0, 0, 1, 1], [], []>} : vector<8x32xbf16>, vector<32x128xbf16>, vector<8x128xf32> -> vector<8x128xf32>
    %cst_3 = arith.constant dense<0.000000e+00> : vector<128xf32>
    %4 = vector.multi_reduction <add>, %3, %cst_3 [0] : vector<8x128xf32> to vector<128xf32>
    %5 = vector.shape_cast %4 : vector<128xf32> to vector<1x128xf32>
    %cst_4 = arith.constant 1.250000e-01 : f32
    %6 = vector.broadcast %cst_4 : f32 to vector<1x128xf32>
    %7 = arith.mulf %5, %6 : vector<1x128xf32>
    %8 = arith.mulf %3, %3 : vector<8x128xf32>
    %cst_5 = arith.constant dense<0.000000e+00> : vector<128xf32>
    %9 = vector.multi_reduction <add>, %8, %cst_5 [0] : vector<8x128xf32> to vector<128xf32>
    %10 = vector.shape_cast %9 : vector<128xf32> to vector<1x128xf32>
    %cst_6 = arith.constant 1.250000e-01 : f32
    %11 = vector.broadcast %cst_6 : f32 to vector<1x128xf32>
    %12 = arith.mulf %10, %11 : vector<1x128xf32>
    %13 = arith.mulf %7, %7 : vector<1x128xf32>
    %14 = arith.subf %12, %13 : vector<1x128xf32>
    %cst_7 = arith.constant 0.000000e+00 : f32
    %15 = vector.broadcast %cst_7 : f32 to vector<1x128xf32>
    %16 = arith.maximumf %14, %15 : vector<1x128xf32>
    %c0_8 = arith.constant 0 : index
    %c0_9 = arith.constant 0 : index
    %17 = vector.load %arg3[%c0_8, %c0_9] : memref<2x128xf32, #tpu.memory_space<vmem>>, vector<1x128xf32>
    %cst_10 = arith.constant 9.99999974E-6 : f32
    %18 = vector.broadcast %cst_10 : f32 to vector<1x128xf32>
    %19 = arith.addf %16, %18 : vector<1x128xf32>
    %20 = math.rsqrt %19 : vector<1x128xf32>
    %21 = arith.mulf %17, %20 : vector<1x128xf32>
    %c1 = arith.constant 1 : index
    %c0_11 = arith.constant 0 : index
    %22 = vector.load %arg3[%c1, %c0_11] : memref<2x128xf32, #tpu.memory_space<vmem>>, vector<1x128xf32>
    %23 = arith.mulf %7, %21 : vector<1x128xf32>
    %24 = arith.subf %22, %23 : vector<1x128xf32>
    %25 = vector.broadcast %21 : vector<1x128xf32> to vector<8x128xf32>
    %26 = arith.mulf %3, %25 : vector<8x128xf32>
    %27 = vector.broadcast %24 : vector<1x128xf32> to vector<8x128xf32>
    %28 = arith.addf %26, %27 : vector<8x128xf32>
    %cst_12 = arith.constant 0.000000e+00 : f32
    %29 = vector.broadcast %cst_12 : f32 to vector<8x128xf32>
    %30 = arith.maximumf %28, %29 : vector<8x128xf32>
    %c0_13 = arith.constant 0 : index
    %c0_14 = arith.constant 0 : index
    %31 = vector.load %arg4[%c0_13, %c0_14] : memref<8x128xf32, #tpu.memory_space<vmem>>, vector<8x128xf32>
    tpu.vector_store %arg4[%c0_13, %c0_14], %30 {strides = array<i32>} : memref<8x128xf32, #tpu.memory_space<vmem>>, vector<8x128xf32>,
    return
  }
  func.func @transform_0(%arg0: i32) -> (i32, i32) {
    %c0_i32 = arith.constant 0 : i32
    %c0_i32_0 = arith.constant 0 : i32
    %c0_i32_1 = arith.constant 0 : i32
    return %c0_i32, %c0_i32_0 : i32, i32
  }
  func.func @transform_1(%arg0: i32) -> (i32, i32) {
    %c0_i32 = arith.constant 0 : i32
    %c0_i32_0 = arith.constant 0 : i32
    return %c0_i32, %arg0 : i32, i32
  }
  func.func @transform_2(%arg0: i32) -> (i32, i32) {
    %c0_i32 = arith.constant 0 : i32
    %c0_i32_0 = arith.constant 0 : i32
    return %c0_i32, %arg0 : i32, i32
  }
  func.func @transform_3(%arg0: i32) -> (i32, i32) {
    %c0_i32 = arith.constant 0 : i32
    %c0_i32_0 = arith.constant 0 : i32
    return %c0_i32, %arg0 : i32, i32
  }
}

</mosaic_0001>

<bundles_post_ra>
// kernel: tpu_custom_call.1
= control target key start
LH: loop header
LB: loop body
LE: loop exit
PB: predicated region body
PF: predicated region fallthrough
CT: control target
= control target key end

     0   :  { %8 = vsyncpa [#allocation3], 0  ;;  %s311_s0 = inlined_call_operand.hbm [shape: f32[8,32], index: 0, kind: input, shape index: {}]   ;;  %s312_s1 = inlined_call_operand.hbm [shape: bf16[32,128], index: 1, kind: input, shape index: {}]   ;;  %s313_s2 = inlined_call_operand.hbm [shape: f32[2,128], index: 2, kind: input, shape index: {}]   ;;  %s314_s3 = inlined_call_operand.hbm [shape: f32[8,128], index: 3, kind: output, shape index: {}]  }
   0x1   :  { %9 = vsyncpa [#allocation6], 0  ;;  %s26_s14 = sshll.u32 %s312_s1, 4  ;;  %s27_s14 = int_to_ptr.hbm [resolvable:$true] %s26_s14 }
   0x2   :  { %10 = vsyncpa [#allocation4], 0  ;;  %s273_s15 = smov [#allocation5]   ;;  %s16_s19 = sshll.u32 %s311_s0, 4  ;;  %s17_s19 = int_to_ptr.hbm [resolvable:$true] %s16_s19 }
   0x3   :  { %s28_s16 = sshll.u32 %s273_s15, 4  ;;  %s274_s20 = smov 64   ;;  %s29_s16 = int_to_ptr.vmem [resolvable:$true] %s28_s16 }
   0x4   :  { %s275_s21 = smov 4   ;;  %s276_s22 = smov [#allocation2]  }
   0x5   :  { %34 = dma.hbm_to_vmem [thread:$0]  %s27_s14, 256, %s29_s16, [#allocation6], %s274_s20, %s274_s20, %s275_s21  }
   0x6   :  { %s18_s23 = sshll.u32 %s276_s22, 4  ;;  %s40_s26 = sshll.u32 %s313_s2, 4  ;;  %s19_s23 = int_to_ptr.vmem [resolvable:$true] %s18_s23  ;;  %s41_s26 = int_to_ptr.hbm [resolvable:$true] %s40_s26 }
   0x7   :  { %21 = dma.hbm_to_vmem [thread:$0]  %s17_s19, 128, %s19_s23, [#allocation3]  }
   0x8   :  { %s277_s1 = smov [#allocation7]  }
   0x9   :  { %s42_s27 = sshll.u32 %s277_s1, 4  ;;  %s43_s27 = int_to_ptr.vmem [resolvable:$true] %s42_s27 }
   0xa   :  { %45 = dma.hbm_to_vmem [thread:$0]  %s41_s26, 32, %s43_s27, [#allocation6]  }
   0xb   :  { %267 = dma.done.wait [#allocation3], 128  }
   0xc   :  { %268 = vsyncadd [#allocation3], 4294967168 }
   0xd   :  { %269 = dma.done.wait [#allocation6], 288  }
   0xe   :  { %270 = vsyncadd [#allocation6], 4294967008  ;;  %v162_v0 = vld [vmem:[#allocation5 + $0x8] sm:$0xff]  ;;  %v161_v1 = vld [vmem:[#allocation5] sm:$0xff]  ;;  %vm77_vm0 = vcmask 261120   ;;  %s278_s0 = smov [#allocation8]  }
   0xf   :  { %87 = vmatpush.bf16.msra.mxu0 %v162_v0  ;;  %v59_v2 = vld [vmem:[#allocation2] sm:$0xff]  ;;  %v112_v30 = vld [vmem:[#allocation7] sm:$0x1]  ;;  %v125_v34 = vld [vmem:[#allocation7 + $0x1] sm:$0x1]  ;;  %s139_s2 = sshll.u32 %s278_s0, 4  ;;  %s140_s2 = int_to_ptr.vmem [resolvable:$true] %s139_s2 }
  0x10   :  { %v60_v3 = vpack.c.bf16 %v59_v2, %v59_v2  ;;  %s141_s30 = sshll.u32 %s314_s3, 4  ;;  %s142_s30 = int_to_ptr.hbm [resolvable:$true] %s141_s30 }
  0x13   :  { %88 = vmatpush.bf16.msra.mxu0 %v161_v1 }
  0x16   :  { %160 = vmatmul.msk.bf16.vlgmr.msra.gmra.mxu0 %vm77_vm0, %v60_v3 }
  0x93   :  { %v90_v4 = vpop.f32.mrf.mxu0 }
  0x94   :  { %v94_v5 = vrot.slane %v90_v4, 4  ;;  %v101_v6 = vmul.f32 %v90_v4, %v90_v4 }
  0x96   :  { %v95_v7 = vadd.f32 %v94_v5, %v90_v4  ;;  %v102_v8 = vrot.slane %v101_v6, 4 }
  0x98   :  { %v96_v9 = vrot.slane %v95_v7, 2  ;;  %v103_v10 = vadd.f32 %v102_v8, %v101_v6 }
  0x9a   :  { %v97_v11 = vadd.f32 %v96_v9, %v95_v7  ;;  %v104_v12 = vrot.slane %v103_v10, 2 }
  0x9b   :  { %v92_v13 = vpop.f32.mrf.mxu0 }
  0x9c   :  { %v98_v14 = vrot.slane %v97_v11, 1  ;;  %v105_v15 = vadd.f32 %v104_v12, %v103_v10 }
  0x9e   :  { %v99_v16 = vadd.f32 %v98_v14, %v97_v11  ;;  %v106_v17 = vrot.slane %v105_v15, 1 }
  0xa0   :  { %v100_v18 = vmul.f32 0.125, %v99_v16  ;;  %v107_v19 = vadd.f32 %v106_v17, %v105_v15 }
  0xa2   :  { %v108_v20 = vmul.f32 0.125, %v107_v19  ;;  %v109_v21 = vmul.f32 %v100_v18, %v100_v18 }
  0xa4   :  { %v110_v22 = vsub.f32 %v108_v20, %v109_v21 }
  0xa6   :  { %v111_v23 = vmax.f32 %v110_v22, 0.0 }
  0xa8   :  { %v113_v24 = vadd.f32 1e-05, %v111_v23 }
  0xaa   :  { %169 = vrsqrt.f32 %v113_v24  ;;  %vm120_vm2 = vweird.f32 %v113_v24 }
  0xb0   :  { %v170_v25 = vpop.eup %169 }
  0xb1   :  { %v115_v26 = vmul.f32 %v170_v25, %v113_v24  ;;  %vm121_vm1 = vweird.f32 %v170_v25 }
  0xb2   :  { %vm122_vm3 = vmor %vm120_vm2, %vm121_vm1 }
  0xb3   :  { %v116_v27 = vmul.f32 %v170_v25, %v115_v26 }
  0xb5   :  { %v117_v28 = vmul.f32 0.5, %v116_v27 }
  0xb7   :  { %v118_v29 = vsub.f32 1.5, %v117_v28 }
  0xb9   :  { %v119_v31 = vmul.f32 %v170_v25, %v118_v29 }
  0xbb   :  { %v123_v32 = vsel %vm122_vm3, %v170_v25, %v119_v31 }
  0xbc   :  { %v124_v33 = vmul.f32 %v123_v32, %v112_v30 }
  0xbe   :  { %v128_v35 = vperm.slane %v124_v33, 0  ;;  %v126_v36 = vmul.f32 %v124_v33, %v100_v18 }
  0xc0   :  { %v127_v37 = vsub.f32 %v125_v34, %v126_v36  ;;  %v129_v38 = vmul.f32 %v128_v35, %v90_v4 }
  0xc2   :  { %v130_v39 = vperm.slane %v127_v37, 0 }
  0xc4   :  { %v131_v40 = vadd.f32 %v130_v39, %v129_v38 }
  0xc6   :  { %v132_v41 = vmax.f32 %v131_v40, 0.0 }
  0xc8   :  { %133 = vst [vmem:[#allocation8] sm:$0xff] %v132_v41 }
  0xc9   :  { %144 = dma.vmem_to_hbm [thread:$0]  %s140_s2, 128, %s142_s30, [#allocation4]  }
  0xca   :  { %271 = dma.done.wait [#allocation4], 128  }
  0xcb   :  { %272 = vsyncadd [#allocation4], 4294967168 }
  0xcc   :  { %149 = vsyncpa [#allocation3], 1 }
  0xcd   :  { %150 = vsyncpa [#allocation6], 1 }
  0xce   :  { %151 = vsyncpa [#allocation4], 1 }

</bundles_post_ra>
